<compile_context>
chip_gen: v5e
topology: v5e:2x2
jax: 0.10.0
libtpu: 0.0.40
codegen_flags: <defaults>
</compile_context>

<pallas_src>
import functools
import jax
import jax.numpy as jnp
from jax.experimental import pallas as pl
from jax.experimental.pallas import tpu as pltpu


# ----------------------------- Fused layer kernel ------------------------------
def _fused_layer_kernel(*refs, eps, num_heads, num_kv_heads, head_size,
                        has_residual):
    if has_residual:
        (x_ref, res_ref, wcat_ref, w2_ref, bias_ref, trig_ref,
         out_ref, attn_sc) = refs
    else:
        (x_ref, wcat_ref, w2_ref, bias_ref, trig_ref, out_ref, attn_sc) = refs
        res_ref = None

    f32, bf16 = jnp.float32, jnp.bfloat16
    T, H = x_ref.shape
    NH, NKV, HS = num_heads, num_kv_heads, head_size
    G = NH // NKV
    q_cols = NH * HS
    k_cols = NKV * HS
    v_cols = NKV * HS
    rope_cols = q_cols + k_cols
    qkv_cols = q_cols + 2 * k_cols

    # ---- input_layernorm (FastLayerNorm with fused residual add), f32 VPU ----
    xr = x_ref[...].astype(f32)
    if has_residual:
        xr = xr + res_ref[...].astype(f32)
    ln_w = bias_ref[1:2, :H]
    ln_b = bias_ref[2:3, :H]
    mean = jnp.mean(xr, axis=-1, keepdims=True)
    xc = xr - mean
    var = jnp.mean(xc * xc, axis=-1, keepdims=True)
    normed = xc * jax.lax.rsqrt(var + eps) * ln_w + ln_b

    # ---- ONE fused projection: [q|k|v | rope-partner(q,k) | fc1] ----
    # softmax scale and the RoPE partner permutation are pre-folded into wcat.
    proj = jnp.dot(normed.astype(bf16), wcat_ref[...], preferred_element_type=f32)
    proj = proj + bias_ref[0:1, :]

    qk = proj[:, :rope_cols]
    v_flat = proj[:, rope_cols:rope_cols + v_cols]
    partner = proj[:, qkv_cols:qkv_cols + rope_cols]
    h1 = proj[:, qkv_cols + rope_cols:]

    # ---- partial NeoX RoPE: pure VPU elementwise (signs baked into sin table) ----
    cos = trig_ref[:, :rope_cols]
    sin = trig_ref[:, rope_cols:]
    qk = qk * cos + partner * sin
    q_flat = qk[:, :q_cols]         # already pre-scaled by 1/sqrt(head_size)
    k_flat = qk[:, q_cols:]

    # ---- causal GQA attention (prefill): one S/O matmul pair per KV head ----
    GT = G * T
    tok = jnp.concatenate(
        [jax.lax.broadcasted_iota(jnp.int32, (T, T), 0)] * G, axis=0)   # (GT,T)
    col = jax.lax.broadcasted_iota(jnp.int32, (GT, T), 1)
    causal = col <= tok
    for g in range(NKV):
        # stack the G q-heads of this group along sublanes -> (G*T, HS)
        q_g = jnp.concatenate(
            [q_flat[:, (g * G + j) * HS:(g * G + j + 1) * HS] for j in range(G)],
            axis=0)
        k_g = k_flat[:, g * HS:(g + 1) * HS]
        v_g = v_flat[:, g * HS:(g + 1) * HS]
        s = jax.lax.dot_general(q_g.astype(bf16), k_g.astype(bf16),
                                (((1,), (1,)), ((), ())),
                                preferred_element_type=f32)             # (GT,T)
        s = jnp.where(causal, s, -jnp.inf)
        m = jnp.max(s, axis=-1, keepdims=True)
        p = jnp.exp(s - m)
        denom = jnp.sum(p, axis=-1, keepdims=True)
        o = jnp.dot(p.astype(bf16), v_g.astype(bf16),
                    preferred_element_type=f32)                         # (GT,HS)
        o = o * pl.reciprocal(denom, approx=True)   # EUP slot, VPU stays free
        for j in range(G):
            h = g * G + j
            attn_sc[:, h * HS:(h + 1) * HS] = o[j * T:(j + 1) * T, :]

    # ---- attention dense: one fat matmul out of the VMEM scratch ----
    dense = jnp.dot(attn_sc[...].astype(bf16), w2_ref[:H, :],
                    preferred_element_type=f32) + bias_ref[3:4, :H]

    # ---- parallel MLP branch: gelu(tanh) in f32, fc2 on bf16 MXU ----
    g1 = 0.5 * h1 * (1.0 + jnp.tanh(0.7978845608028654 *
                                    (h1 + 0.044715 * h1 * h1 * h1)))
    mlp = jnp.dot(g1.astype(bf16), w2_ref[H:, :],
                  preferred_element_type=f32) + bias_ref[4:5, :H]

    # ---- attention + MLP residual add (resid_dropout p=0 is identity) ----
    out = dense + mlp

    # ---- lane-dense [T, 2H] output slab: [layer_out | residual_out] ----
    out_ref[...] = jnp.concatenate([out, xr], axis=-1).astype(out_ref.dtype)


# ----------------------- One-time precompute (per seq len) ---------------------
def prepare_layer(params, cos, sin, cfg):
    """Hoisted out of the per-layer call path: fold scale + RoPE permutation into
    the fused weight, build per-column trig tables, pack constants into slabs."""
    NH, NKV, HS = cfg["num_heads"], cfg["num_kv_heads"], cfg["head_size"]
    rd2 = cfg["rotary_dim"] // 2
    T = cos.shape[0]
    H = params["dense_w"].shape[0]
    q_cols, k_cols, v_cols = NH * HS, NKV * HS, NKV * HS
    rope_cols = q_cols + k_cols
    scale = HS ** -0.5

    # (1) fold softmax scale into the q columns (RoPE is linear -> exact)
    col_scale = jnp.concatenate(
        [jnp.full((q_cols,), scale, jnp.float32),
         jnp.ones((k_cols + v_cols,), jnp.float32)])
    qkv_w = params["qkv_w"].astype(jnp.float32) * col_scale[None, :]
    qkv_b = params["qkv_b"].astype(jnp.float32) * col_scale

    # (2) fold the RoPE partner permutation into extra projection columns
    P = jnp.zeros((HS, HS), jnp.float32)
    idx = jnp.arange(rd2)
    P = P.at[idx + rd2, idx].set(1.0)   # partner(i < rd2)          = x[i + rd2]
    P = P.at[idx, idx + rd2].set(1.0)   # partner(rd2 <= i < 2*rd2) = x[i - rd2]
    P_qk = jnp.kron(jnp.eye(NH + NKV, dtype=jnp.float32), P)
    w_partner = qkv_w[:, :rope_cols] @ P_qk
    b_partner = qkv_b[:rope_cols] @ P_qk

    # (3) per-column RoPE tables with signs baked in
    pad = HS - 2 * rd2
    cos_head = jnp.concatenate([cos, cos, jnp.ones((T, pad), jnp.float32)], axis=1)
    sin_head = jnp.concatenate([-sin, sin, jnp.zeros((T, pad), jnp.float32)], axis=1)
    cos_qk = jnp.tile(cos_head, (1, NH + NKV))
    sin_qk = jnp.tile(sin_head, (1, NH + NKV))
    trig = jnp.concatenate([cos_qk, sin_qk], axis=1).astype(jnp.float32)

    # (4) ONE fused [qkv | partner | fc1] weight, stored bf16 for the MXU
    w_cat = jnp.concatenate(
        [qkv_w, w_partner, params["fc1_w"].astype(jnp.float32)],
        axis=1).astype(jnp.bfloat16)
    b_cat = jnp.concatenate(
        [qkv_b, b_partner, params["fc1_b"].astype(jnp.float32)])

    # (5) second weight slab [dense_w ; fc2_w], bf16
    w2 = jnp.concatenate([params["dense_w"], params["fc2_w"]],
                         axis=0).astype(jnp.bfloat16)

    # (6) all tiny constants packed into one f32 slab -> one DMA
    p_cols = w_cat.shape[1]

    def row(v):
        v = v.reshape(1, -1).astype(jnp.float32)
        return jnp.pad(v, ((0, 0), (0, p_cols - v.shape[1])))

    bias = jnp.concatenate(
        [b_cat.reshape(1, -1), row(params["ln_w"]), row(params["ln_b"]),
         row(params["dense_b"]), row(params["fc2_b"])], axis=0)

    return dict(w_cat=w_cat, w2=w2, bias=bias, trig=trig)


# ------------------------------- Layer wrapper ----------------------------------
def flash_phi_layer(prep, hidden_states, residual, cfg, seq_len):
    TT, H = hidden_states.shape
    T = seq_len
    B = TT // T
    has_residual = residual is not None
    NH, NKV, HS = cfg["num_heads"], cfg["num_kv_heads"], cfg["head_size"]
    G = NH // NKV
    P_COLS = prep["w_cat"].shape[1]
    INTER = prep["w2"].shape[0] - H

    inputs = [hidden_states]
    specs = [pl.BlockSpec((T, H), lambda b: (b, 0))]
    if has_residual:
        inputs.append(residual)
        specs.append(pl.BlockSpec((T, H), lambda b: (b, 0)))
    for name in ("w_cat", "w2", "bias", "trig"):
        a = prep[name]
        inputs.append(a)
        specs.append(pl.BlockSpec(a.shape, lambda b: (0, 0)))  # resident weights

    flops_per_seq = (2 * T * H * P_COLS
                     + NKV * (2 * (G * T) * HS * T + 2 * (G * T) * T * HS)
                     + 2 * T * (NH * HS) * H
                     + 2 * T * INTER * H)
    trans_per_seq = NKV * G * T * T + T * INTER + T
    bytes_accessed = (sum(int(a.size) * a.dtype.itemsize for a in inputs)
                      + TT * 2 * H * hidden_states.dtype.itemsize)
    cost = pl.CostEstimate(flops=B * flops_per_seq,
                           transcendentals=B * trans_per_seq,
                           bytes_accessed=bytes_accessed)

    slab = pl.pallas_call(
        functools.partial(
            _fused_layer_kernel,
            eps=cfg["eps"],
            num_heads=NH,
            num_kv_heads=NKV,
            head_size=HS,
            has_residual=has_residual),
        grid=(B,),
        in_specs=specs,
        out_specs=pl.BlockSpec((T, 2 * H), lambda b: (b, 0)),
        out_shape=jax.ShapeDtypeStruct((TT, 2 * H), hidden_states.dtype),
        scratch_shapes=[pltpu.VMEM((T, NH * HS), jnp.float32)],
        compiler_params=pltpu.CompilerParams(dimension_semantics=("parallel",)),
        cost_estimate=cost,
    )(*inputs)

    return slab[:, :H], slab[:, H:]


# ----------------------------- Pure-JAX reference ------------------------------
def _ref_layer(params, x, residual, cos, sin, cfg):
    NH, NKV, HS = cfg["num_heads"], cfg["num_kv_heads"], cfg["head_size"]
    rd2 = cfg["rotary_dim"] // 2
    T, H = x.shape
    xr = x + residual if residual is not None else x
    mean = jnp.mean(xr, -1, keepdims=True)
    var = jnp.mean((xr - mean) ** 2, -1, keepdims=True)
    normed = (xr - mean) * jax.lax.rsqrt(var + cfg["eps"]) * params["ln_w"] + params["ln_b"]

    qkv = normed @ params["qkv_w"] + params["qkv_b"]
    q = qkv[:, : NH * HS].reshape(T, NH, HS)
    k = qkv[:, NH * HS: NH * HS + NKV * HS].reshape(T, NKV, HS)
    v = qkv[:, NH * HS + NKV * HS:].reshape(T, NKV, HS)

    def rope(t):
        x1, x2, rest = t[..., :rd2], t[..., rd2:2 * rd2], t[..., 2 * rd2:]
        c, s = cos[:, None, :], sin[:, None, :]
        return jnp.concatenate([x1 * c - x2 * s, x2 * c + x1 * s, rest], axis=-1)

    q, k = rope(q), rope(k)
    groups = NH // NKV
    kf = jnp.repeat(k, groups, axis=1)
    vf = jnp.repeat(v, groups, axis=1)
    s = jnp.einsum("tnh,snh->nts", q, kf) * HS ** -0.5
    mask = jnp.tril(jnp.ones((T, T), bool))
    s = jnp.where(mask[None], s, -jnp.inf)
    p = jax.nn.softmax(s, axis=-1)
    attn = jnp.einsum("nts,snh->tnh", p, vf).reshape(T, NH * HS)
    dense = attn @ params["dense_w"] + params["dense_b"]

    h1 = normed @ params["fc1_w"] + params["fc1_b"]
    h1 = 0.5 * h1 * (1.0 + jnp.tanh(0.7978845608028654 * (h1 + 0.044715 * h1 ** 3)))
    mlp = h1 @ params["fc2_w"] + params["fc2_b"]
    return dense + mlp, xr


# ----------------------------------- main --------------------------------------
if __name__ == "__main__":
    B = 2                              # independent prefill sequences (parallel grid)
    T, H = 8, 64
    NH, NKV = 4, 2
    HS = H // NH                       # 16
    rotary_dim = int(0.5 * HS)         # 8
    rd2 = rotary_dim // 2
    INTER = 128
    cfg = dict(num_heads=NH, num_kv_heads=NKV, head_size=HS,
               rotary_dim=rotary_dim, eps=1e-5)
    dtype = jnp.float32

    key = jax.random.PRNGKey(0)
    ks = jax.random.split(key, 12)
    nrm = lambda k, shape, sc=0.02: (sc * jax.random.normal(k, shape)).astype(dtype)

    qkv_out = (NH + 2 * NKV) * HS
    params = dict(
        ln_w=(1.0 + nrm(ks[0], (H,), 0.1)),
        ln_b=nrm(ks[1], (H,), 0.1),
        qkv_w=nrm(ks[2], (H, qkv_out)),      # stored as [in, out] (torch weight transposed)
        qkv_b=nrm(ks[3], (qkv_out,)),
        dense_w=nrm(ks[4], (H, H)),
        dense_b=nrm(ks[5], (H,)),
        fc1_w=nrm(ks[6], (H, INTER)),
        fc1_b=nrm(ks[7], (INTER,)),
        fc2_w=nrm(ks[8], (INTER, H)),
        fc2_b=nrm(ks[9], (H,)),
    )

    hidden_states = nrm(ks[10], (B * T, H), 1.0)
    residual = nrm(ks[11], (B * T, H), 1.0)

    inv_freq = 1.0 / (10000.0 ** (jnp.arange(rd2, dtype=jnp.float32) * 2.0 / rotary_dim))
    pos = jnp.arange(T, dtype=jnp.float32)
    freqs = pos[:, None] * inv_freq[None, :]
    cos = jnp.cos(freqs).astype(jnp.float32)   # (T, rotary_dim // 2)
    sin = jnp.sin(freqs).astype(jnp.float32)

    prep = prepare_layer(params, cos, sin, cfg)   # once per seq-len, reused across layers
    out, res = flash_phi_layer(prep, hidden_states, residual, cfg, seq_len=T)
    jax.block_until_ready((out, res))

    ref_outs, ref_ress = [], []
    for b in range(B):
        ro, rr = _ref_layer(params, hidden_states[b * T:(b + 1) * T],
                            residual[b * T:(b + 1) * T], cos, sin, cfg)
        ref_outs.append(ro)
        ref_ress.append(rr)
    ref_out = jnp.concatenate(ref_outs, axis=0)
    ref_res = jnp.concatenate(ref_ress, axis=0)

    assert jnp.allclose(out, ref_out, rtol=2e-2, atol=2e-2), "output mismatch"
    assert jnp.allclose(res, ref_res, rtol=2e-2, atol=2e-2), "residual mismatch"

    print("KERNEL_OK")
</pallas_src>

<mosaic_0001>
module attributes {stable_mosaic.version = 11 : i64} {
  func.func @_fused_layer_kernel(%arg0: i32, %arg1: memref<8x64xf32, #tpu.memory_space<vmem>>, %arg2: memref<8x64xf32, #tpu.memory_space<vmem>>, %arg3: memref<64x352xbf16, #tpu.memory_space<vmem>>, %arg4: memref<192x64xbf16, #tpu.memory_space<vmem>>, %arg5: memref<5x352xf32, #tpu.memory_space<vmem>>, %arg6: memref<8x192xf32, #tpu.memory_space<vmem>>, %arg7: memref<8x128xf32, #tpu.memory_space<vmem>>, %arg8: memref<8x64xf32, #tpu.memory_space<vmem>>) attributes {dimension_semantics = [#tpu.dimension_semantics<parallel>], iteration_bounds = array<i64: 2>, scalar_prefetch = 0 : i64, scratch_operands = 1 : i64, tpu.core_type = #tpu.core_type<tc>, window_params = [{transform_indices = @transform_0, window_bounds = array<i64: 8, 64>}, {transform_indices = @transform_1, window_bounds = array<i64: 8, 64>}, {pipeline_mode = #tpu.pipeline_mode<synchronous>, transform_indices = @transform_2, window_bounds = array<i64: 64, 352>}, {pipeline_mode = #tpu.pipeline_mode<synchronous>, transform_indices = @transform_3, window_bounds = array<i64: 192, 64>}, {pipeline_mode = #tpu.pipeline_mode<synchronous>, transform_indices = @transform_4, window_bounds = array<i64: 5, 352>}, {pipeline_mode = #tpu.pipeline_mode<synchronous>, transform_indices = @transform_5, window_bounds = array<i64: 8, 192>}, {transform_indices = @transform_6, window_bounds = array<i64: 8, 128>}]} {
    %c0 = arith.constant 0 : index
    %c0_0 = arith.constant 0 : index
    %0 = vector.load %arg1[%c0, %c0_0] : memref<8x64xf32, #tpu.memory_space<vmem>>, vector<8x64xf32>
    %c0_1 = arith.constant 0 : index
    %c0_2 = arith.constant 0 : index
    %1 = vector.load %arg2[%c0_1, %c0_2] : memref<8x64xf32, #tpu.memory_space<vmem>>, vector<8x64xf32>
    %2 = arith.addf %0, %1 : vector<8x64xf32>
    %c1 = arith.constant 1 : index
    %c0_3 = arith.constant 0 : index
    %3 = vector.load %arg5[%c1, %c0_3] : memref<5x352xf32, #tpu.memory_space<vmem>>, vector<1x64xf32>
    %c2 = arith.constant 2 : index
    %c0_4 = arith.constant 0 : index
    %4 = vector.load %arg5[%c2, %c0_4] : memref<5x352xf32, #tpu.memory_space<vmem>>, vector<1x64xf32>
    %cst = arith.constant dense<0.000000e+00> : vector<8xf32>
    %5 = vector.multi_reduction <add>, %2, %cst [1] : vector<8x64xf32> to vector<8xf32>
    %6 = vector.shape_cast %5 : vector<8xf32> to vector<8x1xf32>
    %cst_5 = arith.constant 6.400000e+01 : f32
    %7 = vector.broadcast %cst_5 : f32 to vector<8x1xf32>
    %8 = arith.divf %6, %7 : vector<8x1xf32>
    %9 = vector.broadcast %8 : vector<8x1xf32> to vector<8x64xf32>
    %10 = arith.subf %2, %9 : vector<8x64xf32>
    %11 = arith.mulf %10, %10 : vector<8x64xf32>
    %cst_6 = arith.constant dense<0.000000e+00> : vector<8xf32>
    %12 = vector.multi_reduction <add>, %11, %cst_6 [1] : vector<8x64xf32> to vector<8xf32>
    %13 = vector.shape_cast %12 : vector<8xf32> to vector<8x1xf32>
    %cst_7 = arith.constant 6.400000e+01 : f32
    %14 = vector.broadcast %cst_7 : f32 to vector<8x1xf32>
    %15 = arith.divf %13, %14 : vector<8x1xf32>
    %cst_8 = arith.constant 9.99999974E-6 : f32
    %16 = vector.broadcast %cst_8 : f32 to vector<8x1xf32>
    %17 = arith.addf %15, %16 : vector<8x1xf32>
    %18 = math.rsqrt %17 : vector<8x1xf32>
    %19 = vector.broadcast %18 : vector<8x1xf32> to vector<8x64xf32>
    %20 = arith.mulf %10, %19 : vector<8x64xf32>
    %21 = vector.broadcast %3 : vector<1x64xf32> to vector<8x64xf32>
    %22 = arith.mulf %20, %21 : vector<8x64xf32>
    %23 = vector.broadcast %4 : vector<1x64xf32> to vector<8x64xf32>
    %24 = arith.addf %22, %23 : vector<8x64xf32>
    %25 = arith.truncf %24 : vector<8x64xf32> to vector<8x64xbf16>
    %c0_9 = arith.constant 0 : index
    %c0_10 = arith.constant 0 : index
    %26 = vector.load %arg3[%c0_9, %c0_10] : memref<64x352xbf16, #tpu.memory_space<vmem>>, vector<64x352xbf16>
    %cst_11 = arith.constant dense<0.000000e+00> : vector<8x352xf32>
    %27 = tpu.matmul %25, %26, %cst_11 {dimension_numbers = #tpu.dot_dimension_numbers<[1], [0], [0], [1], [0, 0, 1, 1], [], []>} : vector<8x64xbf16>, vector<64x352xbf16>, vector<8x352xf32> -> vector<8x352xf32>
    %c0_12 = arith.constant 0 : index
    %c0_13 = arith.constant 0 : index
    %28 = vector.load %arg5[%c0_12, %c0_13] : memref<5x352xf32, #tpu.memory_space<vmem>>, vector<1x352xf32>
    %29 = vector.broadcast %28 : vector<1x352xf32> to vector<8x352xf32>
    %30 = arith.addf %27, %29 : vector<8x352xf32>
    %31 = vector.extract_strided_slice %30 {offsets = [0, 0], sizes = [8, 96], strides = [1, 1]} : vector<8x352xf32> to vector<8x96xf32>
    %32 = vector.extract_strided_slice %30 {offsets = [0, 96], sizes = [8, 32], strides = [1, 1]} : vector<8x352xf32> to vector<8x32xf32>
    %33 = vector.extract_strided_slice %30 {offsets = [0, 128], sizes = [8, 96], strides = [1, 1]} : vector<8x352xf32> to vector<8x96xf32>
    %34 = vector.extract_strided_slice %30 {offsets = [0, 224], sizes = [8, 128], strides = [1, 1]} : vector<8x352xf32> to vector<8x128xf32>
    %c0_14 = arith.constant 0 : index
    %c0_15 = arith.constant 0 : index
    %35 = vector.load %arg6[%c0_14, %c0_15] : memref<8x192xf32, #tpu.memory_space<vmem>>, vector<8x96xf32>
    %c0_16 = arith.constant 0 : index
    %c96 = arith.constant 96 : index
    %36 = vector.load %arg6[%c0_16, %c96] : memref<8x192xf32, #tpu.memory_space<vmem>>, vector<8x96xf32>
    %37 = arith.mulf %31, %35 : vector<8x96xf32>
    %38 = arith.mulf %33, %36 : vector<8x96xf32>
    %39 = arith.addf %37, %38 : vector<8x96xf32>
    %40 = vector.extract_strided_slice %39 {offsets = [0, 0], sizes = [8, 64], strides = [1, 1]} : vector<8x96xf32> to vector<8x64xf32>
    %41 = vector.extract_strided_slice %39 {offsets = [0, 64], sizes = [8, 32], strides = [1, 1]} : vector<8x96xf32> to vector<8x32xf32>
    %42 = tpu.iota {dimensions = array<i32: 0>} : vector<8x8xi32>
    %43 = tpu.concatenate %42, %42 in 0 : vector<8x8xi32>, vector<8x8xi32> -> vector<16x8xi32>
    %44 = tpu.iota {dimensions = array<i32: 1>} : vector<16x8xi32>
    %45 = arith.cmpi sle, %44, %43 : vector<16x8xi32>
    %46 = vector.extract_strided_slice %40 {offsets = [0, 0], sizes = [8, 16], strides = [1, 1]} : vector<8x64xf32> to vector<8x16xf32>
    %47 = vector.extract_strided_slice %40 {offsets = [0, 16], sizes = [8, 16], strides = [1, 1]} : vector<8x64xf32> to vector<8x16xf32>
    %48 = tpu.concatenate %46, %47 in 0 : vector<8x16xf32>, vector<8x16xf32> -> vector<16x16xf32>
    %49 = vector.extract_strided_slice %41 {offsets = [0, 0], sizes = [8, 16], strides = [1, 1]} : vector<8x32xf32> to vector<8x16xf32>
    %50 = vector.extract_strided_slice %32 {offsets = [0, 0], sizes = [8, 16], strides = [1, 1]} : vector<8x32xf32> to vector<8x16xf32>
    %51 = arith.truncf %48 : vector<16x16xf32> to vector<16x16xbf16>
    %52 = arith.truncf %49 : vector<8x16xf32> to vector<8x16xbf16>
    %cst_17 = arith.constant dense<0.000000e+00> : vector<16x8xf32>
    %53 = tpu.matmul %51, %52, %cst_17 {dimension_numbers = #tpu.dot_dimension_numbers<[1], [1], [0], [0], [0, 0, 1, 0], [], []>} : vector<16x16xbf16>, vector<8x16xbf16>, vector<16x8xf32> -> vector<16x8xf32>
    %cst_18 = arith.constant 0xFF800000 : f32
    %54 = vector.broadcast %cst_18 : f32 to vector<16x8xf32>
    %55 = arith.select %45, %53, %54 : vector<16x8xi1>, vector<16x8xf32>
    %cst_19 = arith.constant dense<0xFF800000> : vector<16xf32>
    %56 = vector.multi_reduction <maximumf>, %55, %cst_19 [1] : vector<16x8xf32> to vector<16xf32>
    %57 = vector.shape_cast %56 : vector<16xf32> to vector<16x1xf32>
    %58 = vector.broadcast %57 : vector<16x1xf32> to vector<16x8xf32>
    %59 = arith.subf %55, %58 : vector<16x8xf32>
    %60 = math.exp %59 : vector<16x8xf32>
    %cst_20 = arith.constant dense<0.000000e+00> : vector<16xf32>
    %61 = vector.multi_reduction <add>, %60, %cst_20 [1] : vector<16x8xf32> to vector<16xf32>
    %62 = vector.shape_cast %61 : vector<16xf32> to vector<16x1xf32>
    %63 = arith.truncf %60 : vector<16x8xf32> to vector<16x8xbf16>
    %64 = arith.truncf %50 : vector<8x16xf32> to vector<8x16xbf16>
    %cst_21 = arith.constant dense<0.000000e+00> : vector<16x16xf32>
    %65 = tpu.matmul %63, %64, %cst_21 {dimension_numbers = #tpu.dot_dimension_numbers<[1], [0], [0], [1], [0, 0, 1, 1], [], []>} : vector<16x8xbf16>, vector<8x16xbf16>, vector<16x16xf32> -> vector<16x16xf32>
    %66 = tpu.reciprocal %62 {approx = true} : vector<16x1xf32> -> vector<16x1xf32>
    %67 = vector.broadcast %66 : vector<16x1xf32> to vector<16x16xf32>
    %68 = arith.mulf %65, %67 : vector<16x16xf32>
    %69 = vector.extract_strided_slice %68 {offsets = [0, 0], sizes = [8, 16], strides = [1, 1]} : vector<16x16xf32> to vector<8x16xf32>
    %c0_22 = arith.constant 0 : index
    %c0_23 = arith.constant 0 : index
    %70 = vector.load %arg8[%c0_22, %c0_23] : memref<8x64xf32, #tpu.memory_space<vmem>>, vector<8x16xf32>
    tpu.vector_store %arg8[%c0_22, %c0_23], %69 {strides = array<i32>} : memref<8x64xf32, #tpu.memory_space<vmem>>, vector<8x16xf32>,
    %71 = vector.extract_strided_slice %68 {offsets = [8, 0], sizes = [8, 16], strides = [1, 1]} : vector<16x16xf32> to vector<8x16xf32>
    %c0_24 = arith.constant 0 : index
    %c16 = arith.constant 16 : index
    %72 = vector.load %arg8[%c0_24, %c16] : memref<8x64xf32, #tpu.memory_space<vmem>>, vector<8x16xf32>
    tpu.vector_store %arg8[%c0_24, %c16], %71 {strides = array<i32>} : memref<8x64xf32, #tpu.memory_space<vmem>>, vector<8x16xf32>,
    %73 = vector.extract_strided_slice %40 {offsets = [0, 32], sizes = [8, 16], strides = [1, 1]} : vector<8x64xf32> to vector<8x16xf32>
    %74 = vector.extract_strided_slice %40 {offsets = [0, 48], sizes = [8, 16], strides = [1, 1]} : vector<8x64xf32> to vector<8x16xf32>
    %75 = tpu.concatenate %73, %74 in 0 : vector<8x16xf32>, vector<8x16xf32> -> vector<16x16xf32>
    %76 = vector.extract_strided_slice %41 {offsets = [0, 16], sizes = [8, 16], strides = [1, 1]} : vector<8x32xf32> to vector<8x16xf32>
    %77 = vector.extract_strided_slice %32 {offsets = [0, 16], sizes = [8, 16], strides = [1, 1]} : vector<8x32xf32> to vector<8x16xf32>
    %78 = arith.truncf %75 : vector<16x16xf32> to vector<16x16xbf16>
    %79 = arith.truncf %76 : vector<8x16xf32> to vector<8x16xbf16>
    %cst_25 = arith.constant dense<0.000000e+00> : vector<16x8xf32>
    %80 = tpu.matmul %78, %79, %cst_25 {dimension_numbers = #tpu.dot_dimension_numbers<[1], [1], [0], [0], [0, 0, 1, 0], [], []>} : vector<16x16xbf16>, vector<8x16xbf16>, vector<16x8xf32> -> vector<16x8xf32>
    %cst_26 = arith.constant 0xFF800000 : f32
    %81 = vector.broadcast %cst_26 : f32 to vector<16x8xf32>
    %82 = arith.select %45, %80, %81 : vector<16x8xi1>, vector<16x8xf32>
    %cst_27 = arith.constant dense<0xFF800000> : vector<16xf32>
    %83 = vector.multi_reduction <maximumf>, %82, %cst_27 [1] : vector<16x8xf32> to vector<16xf32>
    %84 = vector.shape_cast %83 : vector<16xf32> to vector<16x1xf32>
    %85 = vector.broadcast %84 : vector<16x1xf32> to vector<16x8xf32>
    %86 = arith.subf %82, %85 : vector<16x8xf32>
    %87 = math.exp %86 : vector<16x8xf32>
    %cst_28 = arith.constant dense<0.000000e+00> : vector<16xf32>
    %88 = vector.multi_reduction <add>, %87, %cst_28 [1] : vector<16x8xf32> to vector<16xf32>
    %89 = vector.shape_cast %88 : vector<16xf32> to vector<16x1xf32>
    %90 = arith.truncf %87 : vector<16x8xf32> to vector<16x8xbf16>
    %91 = arith.truncf %77 : vector<8x16xf32> to vector<8x16xbf16>
    %cst_29 = arith.constant dense<0.000000e+00> : vector<16x16xf32>
    %92 = tpu.matmul %90, %91, %cst_29 {dimension_numbers = #tpu.dot_dimension_numbers<[1], [0], [0], [1], [0, 0, 1, 1], [], []>} : vector<16x8xbf16>, vector<8x16xbf16>, vector<16x16xf32> -> vector<16x16xf32>
    %93 = tpu.reciprocal %89 {approx = true} : vector<16x1xf32> -> vector<16x1xf32>
    %94 = vector.broadcast %93 : vector<16x1xf32> to vector<16x16xf32>
    %95 = arith.mulf %92, %94 : vector<16x16xf32>
    %96 = vector.extract_strided_slice %95 {offsets = [0, 0], sizes = [8, 16], strides = [1, 1]} : vector<16x16xf32> to vector<8x16xf32>
    %c0_30 = arith.constant 0 : index
    %c32 = arith.constant 32 : index
    %97 = vector.load %arg8[%c0_30, %c32] : memref<8x64xf32, #tpu.memory_space<vmem>>, vector<8x16xf32>
    tpu.vector_store %arg8[%c0_30, %c32], %96 {strides = array<i32>} : memref<8x64xf32, #tpu.memory_space<vmem>>, vector<8x16xf32>,
    %98 = vector.extract_strided_slice %95 {offsets = [8, 0], sizes = [8, 16], strides = [1, 1]} : vector<16x16xf32> to vector<8x16xf32>
    %c0_31 = arith.constant 0 : index
    %c48 = arith.constant 48 : index
    %99 = vector.load %arg8[%c0_31, %c48] : memref<8x64xf32, #tpu.memory_space<vmem>>, vector<8x16xf32>
    tpu.vector_store %arg8[%c0_31, %c48], %98 {strides = array<i32>} : memref<8x64xf32, #tpu.memory_space<vmem>>, vector<8x16xf32>,
    %c0_32 = arith.constant 0 : index
    %c0_33 = arith.constant 0 : index
    %100 = vector.load %arg8[%c0_32, %c0_33] : memref<8x64xf32, #tpu.memory_space<vmem>>, vector<8x64xf32>
    %101 = arith.truncf %100 : vector<8x64xf32> to vector<8x64xbf16>
    %c0_34 = arith.constant 0 : index
    %c0_35 = arith.constant 0 : index
    %102 = vector.load %arg4[%c0_34, %c0_35] : memref<192x64xbf16, #tpu.memory_space<vmem>>, vector<64x64xbf16>
    %cst_36 = arith.constant dense<0.000000e+00> : vector<8x64xf32>
    %103 = tpu.matmul %101, %102, %cst_36 {dimension_numbers = #tpu.dot_dimension_numbers<[1], [0], [0], [1], [0, 0, 1, 1], [], []>} : vector<8x64xbf16>, vector<64x64xbf16>, vector<8x64xf32> -> vector<8x64xf32>
    %c3 = arith.constant 3 : index
    %c0_37 = arith.constant 0 : index
    %104 = vector.load %arg5[%c3, %c0_37] : memref<5x352xf32, #tpu.memory_space<vmem>>, vector<1x64xf32>
    %105 = vector.broadcast %104 : vector<1x64xf32> to vector<8x64xf32>
    %106 = arith.addf %103, %105 : vector<8x64xf32>
    %cst_38 = arith.constant 5.000000e-01 : f32
    %107 = vector.broadcast %cst_38 : f32 to vector<8x128xf32>
    %108 = arith.mulf %107, %34 : vector<8x128xf32>
    %cst_39 = arith.constant 4.471500e-02 : f32
    %109 = vector.broadcast %cst_39 : f32 to vector<8x128xf32>
    %110 = arith.mulf %109, %34 : vector<8x128xf32>
    %111 = arith.mulf %110, %34 : vector<8x128xf32>
    %112 = arith.mulf %111, %34 : vector<8x128xf32>
    %113 = arith.addf %34, %112 : vector<8x128xf32>
    %cst_40 = arith.constant 0.797884583 : f32
    %114 = vector.broadcast %cst_40 : f32 to vector<8x128xf32>
    %115 = arith.mulf %114, %113 : vector<8x128xf32>
    %116 = math.tanh %115 : vector<8x128xf32>
    %cst_41 = arith.constant 1.000000e+00 : f32
    %117 = vector.broadcast %cst_41 : f32 to vector<8x128xf32>
    %118 = arith.addf %117, %116 : vector<8x128xf32>
    %119 = arith.mulf %108, %118 : vector<8x128xf32>
    %120 = arith.truncf %119 : vector<8x128xf32> to vector<8x128xbf16>
    %c64 = arith.constant 64 : index
    %c0_42 = arith.constant 0 : index
    %121 = vector.load %arg4[%c64, %c0_42] : memref<192x64xbf16, #tpu.memory_space<vmem>>, vector<128x64xbf16>
    %cst_43 = arith.constant dense<0.000000e+00> : vector<8x64xf32>
    %122 = tpu.matmul %120, %121, %cst_43 {dimension_numbers = #tpu.dot_dimension_numbers<[1], [0], [0], [1], [0, 0, 1, 1], [], []>} : vector<8x128xbf16>, vector<128x64xbf16>, vector<8x64xf32> -> vector<8x64xf32>
    %c4 = arith.constant 4 : index
    %c0_44 = arith.constant 0 : index
    %123 = vector.load %arg5[%c4, %c0_44] : memref<5x352xf32, #tpu.memory_space<vmem>>, vector<1x64xf32>
    %124 = vector.broadcast %123 : vector<1x64xf32> to vector<8x64xf32>
    %125 = arith.addf %122, %124 : vector<8x64xf32>
    %126 = arith.addf %106, %125 : vector<8x64xf32>
    %127 = tpu.concatenate %126, %2 in 1 : vector<8x64xf32>, vector<8x64xf32> -> vector<8x128xf32>
    %c0_45 = arith.constant 0 : index
    %c0_46 = arith.constant 0 : index
    %128 = vector.load %arg7[%c0_45, %c0_46] : memref<8x128xf32, #tpu.memory_space<vmem>>, vector<8x128xf32>
    tpu.vector_store %arg7[%c0_45, %c0_46], %127 {strides = array<i32>} : memref<8x128xf32, #tpu.memory_space<vmem>>, vector<8x128xf32>,
    return
  }
  func.func @transform_0(%arg0: i32) -> (i32, i32) {
    %c0_i32 = arith.constant 0 : i32
    %c0_i32_0 = arith.constant 0 : i32
    return %arg0, %c0_i32 : i32, i32
  }
  func.func @transform_1(%arg0: i32) -> (i32, i32) {
    %c0_i32 = arith.constant 0 : i32
    %c0_i32_0 = arith.constant 0 : i32
    return %arg0, %c0_i32 : i32, i32
  }
  func.func @transform_2(%arg0: i32) -> (i32, i32) {
    %c0_i32 = arith.constant 0 : i32
    %c0_i32_0 = arith.constant 0 : i32
    %c0_i32_1 = arith.constant 0 : i32
    return %c0_i32, %c0_i32_0 : i32, i32
  }
  func.func @transform_3(%arg0: i32) -> (i32, i32) {
    %c0_i32 = arith.constant 0 : i32
    %c0_i32_0 = arith.constant 0 : i32
    %c0_i32_1 = arith.constant 0 : i32
    return %c0_i32, %c0_i32_0 : i32, i32
  }
  func.func @transform_4(%arg0: i32) -> (i32, i32) {
    %c0_i32 = arith.constant 0 : i32
    %c0_i32_0 = arith.constant 0 : i32
    %c0_i32_1 = arith.constant 0 : i32
    return %c0_i32, %c0_i32_0 : i32, i32
  }
  func.func @transform_5(%arg0: i32) -> (i32, i32) {
    %c0_i32 = arith.constant 0 : i32
    %c0_i32_0 = arith.constant 0 : i32
    %c0_i32_1 = arith.constant 0 : i32
    return %c0_i32, %c0_i32_0 : i32, i32
  }
  func.func @transform_6(%arg0: i32) -> (i32, i32) {
    %c0_i32 = arith.constant 0 : i32
    %c0_i32_0 = arith.constant 0 : i32
    return %arg0, %c0_i32 : i32, i32
  }
}

</mosaic_0001>

<bundles_post_ra>
// kernel: tpu_custom_call.1
= control target key start
LH: loop header
LB: loop body
LE: loop exit
PB: predicated region body
PF: predicated region fallthrough
CT: control target
= control target key end

     0   :  { %11 = vsyncpa [#allocation4], 0  ;;  %s1548_s0 = inlined_call_operand.vmem [shape: f32[16,64], index: 0, kind: input, shape index: {}]   ;;  %s1549_s1 = inlined_call_operand.vmem [shape: f32[16,64], index: 1, kind: input, shape index: {}]   ;;  %s1550_s2 = inlined_call_operand.vmem [shape: bf16[64,352], index: 2, kind: input, shape index: {}]   ;;  %s1551_s3 = inlined_call_operand.vmem [shape: bf16[192,64], index: 3, kind: input, shape index: {}]   ;;  %s1552_s4 = inlined_call_operand.vmem [shape: f32[5,352], index: 4, kind: input, shape index: {}]   ;;  %s1553_s5 = inlined_call_operand.hbm [shape: f32[8,192], index: 5, kind: input, shape index: {}]   ;;  %s1554_s6 = inlined_call_operand.hbm [shape: f32[16,128], index: 6, kind: output, shape index: {}]  }
   0x1   :  { %12 = vsyncpa [#allocation5], 0 }
   0x2   :  { %14 = vsyncpa [#allocation5 + $0x1], 0  ;;  %s1266_s21 = smov 0   ;;  %s1268_s22 = smov 0  }
   0x3   :  { %s1270_s23 = smov 0   ;;  %s1272_s24 = smov 0  }
   0x4 LB: > { %s1287_s25 = sadd.s32 4294967295, %s1221_s24   ;;  %s903_s26 = sadd.s32 4294967294, %s1221_s24   ;;  %s1221_s24 = sphi %s1272_s24, %s1560_s24   ;;  %s1217_s23 = sphi %s1270_s23, %s1559_s23   ;;  %s1213_s22 = sphi %s1268_s22, %s1558_s22   ;;  %s1209_s21 = sphi %s1266_s21, %s1557_s21  }
   0x5   : > { %s1291_s27 = sadd.s32 1, %s1221_s24   ;;  %s163_s28 = sadd.s32 1, %s1217_s23 }
   0x6   : > { %s160_s29 = ssub.s32 %s1221_s24, %s1291_s27  ;;  %p173_p0 = scmp.ne.s32.totalorder %s1217_s23, %s1213_s22 }
   0x7   : > { %p161_p1 = scmp.eq.s32.totalorder %s160_s29, 0  ;;  %p174_p2 = scmp.eq.s32.totalorder %s1287_s25, 1 }
   0x8   : > { %p179_p3 = scmp.ne.s32.totalorder %s1213_s22, %s1209_s21  ;;  %p180_p4 = scmp.eq.s32.totalorder %s903_s26, 1 }
   0x9   : > { %s1302_s30 = scalar_select %p161_p1, %s1217_s23, %s163_s28  }
   0xa   : > { %p1304_p5 = por %p174_p2, %p173_p0  ;;  %p1308_p6 = por %p180_p4, %p179_p3 }
   0xb   : > { %p904_p7 = scmp.ge.s32.totalorder %s1221_s24, 1  ;;  %p187_p8 = scmp.lt.s32.totalorder %s1221_s24, 3 }
   0xc   : > { %p1058_p9 = scmp.eq.s32.totalorder %s1287_s25, 0  ;;  %s208_s11 = sshll.u32 %s1553_s5, 4  ;;  %s209_s11 = int_to_ptr.hbm [resolvable:$true] %s208_s11 }
   0xd   : > { %p188_p10 = pnand %p904_p7, %p187_p8  ;;  %s1223_s12 = smov [#allocation3]  }
   0xe   : > { %s210_s13 = sshll.u32 %s1223_s12, 4  ;;  %s211_s13 = int_to_ptr.vmem [resolvable:$true] %s210_s13 }
   0xf   : > { %p1050_p11 = pneg %p188_p10  ;;  %237 = sbr.rel (%p188_p10) target bundleno = 1329 (0x531), region = 44 }
  0x11   : > { %p1051_p12 = pnand %p1058_p9, %p1050_p11 }
  0x13   : > { %1053 = dma.hbm_to_vmem [thread:$0]  (!%p1051_p12), %s209_s11, 256, %s211_s13, [#allocation4]  }
  0x14   : > { %1200 = dma.done.wait (%p1058_p9), [#allocation4], 256  }
  0x15   : > { %1202 = vsyncadd (%p1058_p9), [#allocation4], 4294967040  ;;  %p271_p13 = scmp.lt.s32.totalorder %s1287_s25, 1  ;;  %vm285_vm0 = vcmask 523264   ;;  %v1224_v4 = vmov 64.0   ;;  %v448_v43 = vld [vmem:[#allocation3] sm:$0xff] }
  0x16   : > { %1101 = vrcp.f32 %v1224_v4  ;;  %v950_v16 = vld [vmem:[%s1550_s2 + $0x48] sm:$0xf]  ;;  %v1030_v17 = vld [vmem:[%s1550_s2 + $0x50] sm:$0xf0]  ;;  %v1029_v18 = vld [vmem:[%s1550_s2 + $0x4c] sm:$0xf] }
  0x17   : > { %s272_s14 = scalar_select %p271_p13, %s1287_s25, 1  ;;  %v951_v19 = vor.u32 %v1030_v17, %v950_v16  ;;  %v952_v20 = vld [vmem:[%s1550_s2 + $0x54] sm:$0xf0]  ;;  %v958_v21 = vld [vmem:[%s1550_s2 + $0x50] sm:$0xf]  ;;  %vm457_vm5 = vcmask 261120  }
  0x18   : > { %v1031_v22 = vld [vmem:[%s1550_s2 + $0x58] sm:$0xf0]  ;;  %v955_v23 = vor.u32 %v1029_v18, %v952_v20  ;;  %v938_v25 = vld [vmem:[%s1550_s2 + $0x30] sm:$0xf]  ;;  %v1026_v27 = vld [vmem:[%s1550_s2 + $0x34] sm:$0xf] }
  0x19   : > { %s910_s15 = sshll.u32 %s272_s14, 3  ;;  %v959_v24 = vor.u32 %v1031_v22, %v958_v21  ;;  %413 = vmatpush.bf16.msra.mxu0 %v951_v19  ;;  %v1027_v26 = vld [vmem:[%s1550_s2 + $0x38] sm:$0xf0]  ;;  %v940_v29 = vld [vmem:[%s1550_s2 + $0x3c] sm:$0xf0]  ;;  %s1225_s17 = smov 32  }
  0x1a   : > { %s274_s18 = scalar_lea.vmem %s1548_s0, %s910_s15  ;;  %s278_s26 = scalar_lea.vmem %s1549_s1, %s910_s15  ;;  %426 = vmatpush.bf16.msra.mxu1 %v955_v23  ;;  %v939_v28 = vor.u32 %v1027_v26, %v938_v25  ;;  %v946_v30 = vld [vmem:[%s1550_s2 + $0x38] sm:$0xf]  ;;  %v1028_v31 = vld [vmem:[%s1550_s2 + $0x40] sm:$0xf0]  ;;  %v943_v32 = vor.u32 %v1026_v27, %v940_v29  ;;  %v1023_v36 = vld [vmem:[%s1550_s2 + $0x1c] sm:$0xf]  ;;  %453 = vrot.lane.b32.xlu1 %v448_v43, %s1225_s17 }
  0x1b   : > { %v280_v0 = vld [vmem:[%s274_s18] sm:$0xff]  ;;  %439 = vmatpush.bf16.msra.mxu2 %v959_v24  ;;  %v947_v33 = vor.u32 %v1028_v31, %v946_v30  ;;  %v926_v34 = vld [vmem:[%s1550_s2 + $0x18] sm:$0xf]  ;;  %v928_v38 = vld [vmem:[%s1550_s2 + $0x24] sm:$0xf0]  ;;  %s1226_s18 = smov 112  }
  0x1c   : > { %v281_v1 = vld [vmem:[%s278_s26] sm:$0xff]  ;;  %v1102_v5 = vpop.eup %1101  ;;  %v1025_v40 = vld [vmem:[%s1550_s2 + $0x28] sm:$0xf0]  ;;  %v931_v41 = vor.u32 %v1023_v36, %v928_v38  ;;  %v916_v48 = vld [vmem:[%s1550_s2 + $0xc] sm:$0xf0]  ;;  %s1227_s19 = smov 48  }
  0x1d   : > { %v1326_v2 = vadd.f32 %v281_v1, %v280_v0  ;;  %v290_v6 = vmul.f32 64.0, %v1102_v5  ;;  %vm294_vm1 = vweird.f32 %v1102_v5  ;;  %414 = vmatpush.bf16.msra.mxu0 %v939_v28  ;;  %v1024_v35 = vld [vmem:[%s1550_s2 + $0x20] sm:$0xf0]  ;;  %v934_v39 = vld [vmem:[%s1550_s2 + $0x20] sm:$0xf]  ;;  %v449_v54 = vld [vmem:[#allocation3 + $0x8] sm:$0xff] }
  0x1e   : > { %427 = vmatpush.bf16.msra.mxu1 %v943_v32  ;;  %v927_v37 = vor.u32 %v1024_v35, %v926_v34  ;;  %v935_v42 = vor.u32 %v1025_v40, %v934_v39  ;;  %v914_v44 = vld [vmem:[%s1550_s2] sm:$0xf]  ;;  %v1021_v45 = vld [vmem:[%s1550_s2 + $0x8] sm:$0xf0]  ;;  %v1020_v47 = vld [vmem:[%s1550_s2 + $0x4] sm:$0xf]  ;;  %v462_v34 = vlaneseq }
  0x1f   : > { %v286_v3 = vsel %vm285_vm0, %v1326_v2, 0.0  ;;  %v291_v7 = vsub.f32 1.0, %v290_v6  ;;  %440 = vmatpush.bf16.msra.mxu2 %v947_v33  ;;  %v915_v46 = vor.u32 %v1021_v45, %v914_v44  ;;  %v922_v49 = vld [vmem:[%s1550_s2 + $0x8] sm:$0xf]  ;;  %v919_v50 = vor.u32 %v1020_v47, %v916_v48  ;;  %v1022_v51 = vld [vmem:[%s1550_s2 + $0x10] sm:$0xf0] }
  0x20   : > { %287 = vadd.xlane.f32.xlu0 %v286_v3  ;;  %v923_v52 = vor.u32 %v1022_v51, %v922_v49  ;;  %v283_v0 = vld [vmem:[%s1552_s4 + $0x1] ss:$0 sm:$0xff]  ;;  %v284_v3 = vld [vmem:[%s1552_s4 + $0x2] ss:$0 sm:$0xff]  ;;  %s1228_s20 = smov 64   ;;  %s1229_s26 = smov 96  }
  0x21   : > { %v292_v8 = vmul.f32 %v1102_v5, %v291_v7  ;;  %415 = vmatpush.bf16.msra.mxu0 %v927_v37  ;;  %vm476_vm6 = vcmask 130048   ;;  %v463_v35 = vshrl.u32 %v462_v34, 7  ;;  %v465_v36 = vand.u32 127, %v462_v34  ;;  %s1230_s28 = smov 16  }
  0x22   : > { %428 = vmatpush.bf16.msra.mxu1 %v931_v41  ;;  %455 = vrot.lane.b32.xlu1 %v449_v54, %s1225_s17  ;;  %vm499_vm8 = vcmask 64512   ;;  %vm526_vm9 = vcmask 1043456   ;;  %vm553_vm10 = vcmask 261248   ;;  %vm631_vm11 = vcmask 392448  }
  0x23   : > { %v293_v9 = vadd.f32 %v1102_v5, %v292_v8  ;;  %441 = vmatpush.bf16.msra.mxu2 %v935_v42  ;;  %v334_v8 = vld [vmem:[%s1552_s4] ss:$8 sm:$0x7]  ;;  %vm466_vm7 = vcmp.le.s32.totalorder %v465_v36, %v463_v35  ;;  %vm637_vm12 = vcmask 523648  }
  0x24   : > { %v338_v19 = vperm.slane %v334_v8, 2 }
  0x25   : > { %v295_v10 = vsel %vm294_vm1, %v1102_v5, %v293_v9  ;;  %416 = vmatpush.bf16.msra.mxu0 %v915_v46  ;;  %v336_v9 = vperm.slane %v334_v8, 0 }
  0x26   : > { %429 = vmatpush.bf16.msra.mxu1 %v919_v50 }
  0x27   : > { %442 = vmatpush.bf16.msra.mxu2 %v923_v52 }
  0x8c   : > { %v454_v7 = vpop.permute.xlu1 %453 }
  0x93   : > { %v288_v11 = vpop.xlane.xlu0 %287 }
  0x94   : > { %v296_v12 = vmul.f32 %v295_v10, %v288_v11  ;;  %v456_v11 = vpop.permute.xlu1 %455 }
  0x95   : > { %v458_v16 = vsel %vm457_vm5, %v454_v7, %v456_v11 }
  0x96   : > { %v1331_v13 = vsub.f32 %v1326_v2, %v296_v12 }
  0x98   : > { %v298_v14 = vmul.f32 %v1331_v13, %v1331_v13 }
  0x9a   : > { %v299_v15 = vsel %vm285_vm0, %v298_v14, 0.0 }
  0x9b   : > { %300 = vadd.xlane.f32.xlu0 %v299_v15 }
 0x10e   : > { %v301_v53 = vpop.xlane.xlu0 %300 }
 0x10f   : > { %v302_v55 = vmul.f32 %v301_v53, %v295_v10  ;;  %v337_v10 = vperm.slane %v334_v8, 1 }
 0x111   : > { %v303_v56 = vadd.f32 1e-05, %v302_v55 }
 0x113   : > { %1103 = vrsqrt.f32 %v303_v56  ;;  %vm310_vm3 = vweird.f32 %v303_v56 }
 0x119   : > { %v1104_v57 = vpop.eup %1103 }
 0x11a   : > { %v305_v58 = vmul.f32 %v1104_v57, %v303_v56  ;;  %vm311_vm2 = vweird.f32 %v1104_v57 }
 0x11b   : > { %vm312_vm4 = vmor %vm310_vm3, %vm311_vm2 }
 0x11c   : > { %v306_v59 = vmul.f32 %v1104_v57, %v305_v58 }
 0x11e   : > { %v307_v60 = vmul.f32 0.5, %v306_v59 }
 0x120   : > { %v308_v61 = vsub.f32 1.5, %v307_v60 }
 0x122   : > { %v309_v62 = vmul.f32 %v1104_v57, %v308_v61 }
 0x124   : > { %v313_v63 = vsel %vm312_vm4, %v1104_v57, %v309_v62 }
 0x125   : > { %v314_v1 = vmul.f32 %v313_v63, %v1331_v13 }
 0x127   : > { %v315_v4 = vmul.f32 %v314_v1, %v283_v0 }
 0x129   : > { %v316_v5 = vadd.f32 %v315_v4, %v284_v3 }
 0x12b   : > { %v317_v6 = vpack.c.bf16 %v316_v5, %v316_v5 }
 0x12d   : > { %960 = vmatmul.msk.bf16.vlgmr.msra.gmra.mxu0 %vm285_vm0, %v317_v6  ;;  %961 = vmatmul.msk.bf16.vlgmr.msra.gmra.mxu1 %vm285_vm0, %v317_v6 }
 0x12e   : > { %962 = vmatmul.msk.bf16.vlgmr.msra.gmra.mxu2 %vm285_vm0, %v317_v6 }
 0x1aa   : > { %v418_v12 = vpop.f32.mrf.mxu0  ;;  %v431_v13 = vpop.f32.mrf.mxu1 }
 0x1ab   : > { %v419_v14 = vadd.f32 %v418_v12, %v336_v9  ;;  %v1423_v15 = vadd.f32 %v431_v13, %v337_v10 }
 0x1ad   : > { %v450_v17 = vmul.f32 %v448_v43, %v419_v14  ;;  %v460_v18 = vmul.f32 %v458_v16, %v1423_v15  ;;  %v519_v43 = vpack.c.bf16 %v419_v14, %v419_v14 }
 0x1af   : > { %v461_v20 = vadd.f32 %v460_v18, %v450_v17 }
 0x1b1   : > { %v444_v21 = vpop.f32.mrf.mxu2  ;;  %468 = vrot.lane.b32.xlu2 %v461_v20, %s1226_s18  ;;  %v472_v22 = vpack.c.bf16 %v461_v20, %v461_v20  ;;  %s268_s18 = sand.u32 1, %s1213_s22  }
 0x1b2   : > { %v1427_v23 = vadd.f32 %v444_v21, %v338_v19  ;;  %v420_v24 = vpop.f32.mrf.mxu0  ;;  %v433_v25 = vpop.f32.mrf.mxu1  ;;  %s805_s14 = scalar_lea.sflag [#allocation5], %s268_s18 }
 0x1b3   : > { %558 = vrot.lane.b32.xlu0 %v472_v22, %s1227_s19  ;;  %v692_v25 = vmul.f32 0.044715, %v1423_v15 }
 0x1b4   : > { %v693_v3 = vmul.f32 0.044715, %v1427_v23 }
 0x1b6   : > { %v695_v6 = vmul.f32 %v693_v3, %v1427_v23 }
 0x1b8   : > { %v697_v10 = vmul.f32 %v695_v6, %v1427_v23  ;;  %v649_v6 = vld [vmem:[%s1552_s4 + $0x3] ss:$0 sm:$0xff] }
 0x1b9   : > { %v446_v26 = vpop.f32.mrf.mxu2  ;;  %474 = vrot.lane.b32.xlu2 %v472_v22, %s1228_s20 }
 0x1ba   : > { %v699_v12 = vadd.f32 %v697_v10, %v1427_v23 }
 0x1bc   : > { %v701_v17 = vmul.f32 0.7978846, %v699_v12 }
 0x20b   : > { %v469_v27 = vpop.permute.xlu2 %468 }
 0x20c   : > { %v471_v28 = vpack.c.bf16 %v469_v27, %v461_v20  ;;  %v691_v20 = vmul.f32 0.5, %v1427_v23  ;;  %v1043_v23 = vld [vmem:[%s1551_s3 + $0x58] sm:$0xff] }
 0x20e   : > { %556 = vrot.lane.b32.xlu1 %v471_v28, %s1229_s26 }
 0x213   : > { %v475_v29 = vpop.permute.xlu2 %474 }
 0x214   : > { %v481_v30 = vsel %vm476_vm6, %v475_v29, 0  ;;  %v694_v29 = vmul.f32 %v692_v25, %v1423_v15 }
 0x215   : > { %490 = vmatpush.bf16.xpose.msrb.mxu0 %v481_v30 }
 0x21c   : > { %963 = vmatmul.msk.bf16.vlgmr.msrb.gmra.mxu0 %vm476_vm6, %v471_v28 }
 0x225   : > { %v559_v31 = vpop.permute.xlu0 %558 }
 0x226   : > { %v564_v32 = vsel %vm476_vm6, %v559_v31, 0  ;;  %v696_v31 = vmul.f32 %v694_v29, %v1423_v15 }
 0x227   : > { %573 = vmatpush.bf16.xpose.msra.mxu0 %v564_v32  ;;  %v1042_v32 = vld [vmem:[%s1551_s3 + $0x50] sm:$0xff] }
 0x228   : > { %v698_v36 = vadd.f32 %v696_v31, %v1423_v15 }
 0x280   : > { %v557_v33 = vpop.permute.xlu1 %556 }
 0x281   : > { %965 = vmatmul.msk.bf16.vlgmr.msra.gmra.mxu0 %vm476_vm6, %v557_v33 }
 0x299   : > { %v492_v37 = vpop.f32.mrf.mxu0 }
 0x29a   : > { %v497_v38 = vsel %vm466_vm7, %v492_v37, -inf }
 0x29b   : > { %v500_v39 = vsel %vm499_vm8, %v497_v38, -inf }
 0x29c   : > { %501 = vmax.xlane.f32.xlu2 %v500_v39  ;;  %v700_v39 = vmul.f32 0.7978846, %v698_v36 }
 0x2a1   : > { %v494_v40 = vpop.f32.mrf.mxu0 }
 0x2a2   : > { %v498_v41 = vsel %vm466_vm7, %v494_v40, -inf }
 0x2a3   : > { %v503_v42 = vsel %vm499_vm8, %v498_v41, -inf }
 0x2a4   : > { %504 = vmax.xlane.f32.xlu1 %v503_v42 }
 0x2bd   : > { %601 = vrot.lane.b32.xlu1 %v519_v43, %s1230_s28 }
 0x2fe   : > { %v575_v44 = vpop.f32.mrf.mxu0 }
 0x2ff   : > { %v580_v45 = vsel %vm466_vm7, %v575_v44, -inf }
 0x300   : > { %v582_v46 = vsel %vm499_vm8, %v580_v45, -inf }
 0x301   : > { %583 = vmax.xlane.f32.xlu0 %v582_v46 }
 0x306   : > { %v577_v47 = vpop.f32.mrf.mxu0 }
 0x307   : > { %v581_v48 = vsel %vm466_vm7, %v577_v47, -inf }
 0x308   : > { %v585_v49 = vsel %vm499_vm8, %v581_v48, -inf }
 0x309   : > { %586 = vmax.xlane.f32.xlu2 %v585_v49 }
 0x30f   : > { %v502_v50 = vpop.xlane.xlu2 %501 }
 0x310   : > { %v506_v51 = vsub.f32 %v497_v38, %v502_v50 }
 0x312   : > { %v508_v52 = vmul.f32 1.442695, %v506_v51  ;;  %v1041_v51 = vld [vmem:[%s1551_s3 + $0x48] sm:$0xff] }
 0x314   : > { %1105 = vpow2.f32 %v508_v52  ;;  %v1040_v52 = vld [vmem:[%s1551_s3 + $0x40] sm:$0xff] }
 0x317   : > { %v505_v53 = vpop.xlane.xlu1 %504 }
 0x318   : > { %v507_v54 = vsub.f32 %v498_v41, %v505_v53  ;;  %v1035_v53 = vld [vmem:[%s1551_s3 + $0x18] sm:$0xff] }
 0x319   : > { %681 = vmatpush.bf16.msrb.mxu2 %v1035_v53 }
 0x31a   : > { %v1106_v55 = vpop.eup %1105  ;;  %v510_v56 = vmul.f32 1.442695, %v507_v54  ;;  %v1034_v54 = vld [vmem:[%s1551_s3 + $0x10] sm:$0xff] }
 0x31b   : > { %v512_v57 = vsel %vm499_vm8, %v1106_v55, 0.0 }
 0x31c   : > { %1107 = vpow2.f32 %v510_v56  ;;  %513 = vadd.xlane.f32.xlu1 %v512_v57  ;;  %v1033_v56 = vld [vmem:[%s1551_s3 + $0x8] sm:$0xff] }
 0x31d   : > { %682 = vmatpush.bf16.msrb.mxu2 %v1034_v54  ;;  %v1037_v57 = vld [vmem:[%s1551_s3 + $0x28] sm:$0xff] }
 0x321   : > { %521 = vrot.lane.b32.xlu2 %v519_v43, %s1225_s17  ;;  %683 = vmatpush.bf16.msrb.mxu2 %v1033_v56 }
 0x322   : > { %v1108_v58 = vpop.eup %1107 }
 0x323   : > { %v515_v59 = vsel %vm499_vm8, %v1108_v58, 0.0  ;;  %v518_v60 = vpack.c.bf16 %v1108_v58, %v1106_v55  ;;  %v1038_v55 = vld [vmem:[%s1551_s3 + $0x30] sm:$0xff]  ;;  %v1032_v58 = vld [vmem:[%s1551_s3] sm:$0xff] }
 0x324   : > { %516 = vadd.xlane.f32.xlu0 %v515_v59  ;;  %v1036_v59 = vld [vmem:[%s1551_s3 + $0x20] sm:$0xff] }
 0x325   : > { %684 = vmatpush.bf16.msrb.mxu2 %v1032_v58 }
 0x32f   : > { %v602_v61 = vpop.permute.xlu1 %601 }
 0x330   : > { %v607_v62 = vsel %vm526_vm9, %v602_v61, 0 }
 0x331   : > { %616 = vmatpush.bf16.msrb.mxu1 %v607_v62 }
 0x335   : > { %799 = vrot.lane.b32.xlu1 %v1326_v2, %s1228_s20  ;;  %s1017_s20 = sshll.u32 %s1287_s25, 3 }
 0x336   : > { %s815_s11 = scalar_lea.hbm %s1554_s6, %s1017_s20 }
 0x337   : > { %s819_s25 = sshll.u32 %s815_s11, 4  ;;  %s820_s25 = int_to_ptr.hbm [resolvable:$true] %s819_s25 }
 0x338   : > { %s1169_s15 = sshra.s32 %s820_s25, 4  ;;  %s1170_s15 = int_to_ptr.hbm [resolvable:$true] %s1169_s15 }
 0x339   : > { %s1171_s16 = scalar_lea.hbm %s1170_s15, 8  ;;  %p1176_p3 = scmp.lt.s32.totalorder %s1170_s15, %s1554_s6 }
 0x33a   : > { %p1172_p0 = scmp.ne.s32.totalorder %s1170_s15, %s1171_s16 }
 0x33c   : > { %p1173_p1 = pnand %p1172_p0, %p1304_p5 }
 0x33e   : > { %p1174_p2 = pneg %p1173_p1 }
 0x374   : > { %v584_v63 = vpop.xlane.xlu0 %583 }
 0x375   : > { %v588_v0 = vsub.f32 %v580_v45, %v584_v63 }
 0x377   : > { %v590_v1 = vmul.f32 1.442695, %v588_v0 }
 0x379   : > { %1109 = vpow2.f32 %v590_v1 }
 0x37c   : > { %v587_v4 = vpop.xlane.xlu2 %586 }
 0x37d   : > { %v589_v5 = vsub.f32 %v581_v48, %v587_v4  ;;  %v690_v48 = vmul.f32 0.5, %v1423_v15  ;;  %v1039_v15 = vld [vmem:[%s1551_s3 + $0x38] sm:$0xff] }
 0x37f   : > { %v1110_v7 = vpop.eup %1109  ;;  %v592_v8 = vmul.f32 1.442695, %v589_v5  ;;  %v726_v5 = vld [vmem:[%s1552_s4 + $0x4] ss:$0 sm:$0xff] }
 0x380   : > { %v594_v9 = vsel %vm499_vm8, %v1110_v7, 0.0 }
 0x381   : > { %1111 = vpow2.f32 %v592_v8  ;;  %595 = vadd.xlane.f32.xlu0 %v594_v9 }
 0x382   : > { %1113 = vtanh.f32 %v701_v17 }
 0x384   : > { %v522_v11 = vpop.permute.xlu2 %521 }
 0x385   : > { %v528_v2 = vsel %vm526_vm9, %v522_v11, 0 }
 0x386   : > { %537 = vmatpush.bf16.msra.mxu3 %v528_v2 }
 0x387   : > { %v1112_v13 = vpop.eup %1111 }
 0x388   : > { %v597_v14 = vsel %vm499_vm8, %v1112_v13, 0.0  ;;  %v600_v16 = vpack.c.bf16 %v1112_v13, %v1110_v7  ;;  %v1114_v18 = vpop.eup %1113 }
 0x389   : > { %598 = vadd.xlane.f32.xlu2 %v597_v14  ;;  %964 = vmatmul.msk.bf16.vlgmr.msra.gmra.mxu3 %vm499_vm8, %v518_v60  ;;  %v705_v19 = vadd.f32 1.0, %v1114_v18 }
 0x38a   : > { %966 = vmatmul.msk.bf16.vlgmr.msrb.gmra.mxu1 %vm499_vm8, %v600_v16  ;;  %784 = vmatpush.bf16.msrb.mxu3 %v1043_v23 }
 0x38b   : > { %v707_v21 = vmul.f32 %v705_v19, %v691_v20 }
 0x38d   : > { %v709_v22 = vpack.c.bf16 %v707_v21, %v707_v21 }
 0x38e   : > { %785 = vmatpush.bf16.msrb.mxu3 %v1042_v32 }
 0x38f   : > { %v514_v24 = vpop.xlane.xlu1 %513 }
 0x390   : > { %1115 = vrcp.f32 %v514_v24 }
 0x392   : > { %786 = vmatpush.bf16.msrb.mxu3 %v1041_v51 }
 0x396   : > { %v1116_v27 = vpop.eup %1115  ;;  %787 = vmatpush.bf16.msrb.mxu3 %v1040_v52 }
 0x397   : > { %v517_v26 = vpop.xlane.xlu0 %516 }
 0x398   : > { %1117 = vrcp.f32 %v517_v26 }
 0x39a   : > { %788 = vmatpush.bf16.msrb.mxu3 %v1039_v15 }
 0x39e   : > { %v1118_v34 = vpop.eup %1117  ;;  %789 = vmatpush.bf16.msrb.mxu3 %v1038_v55 }
 0x3a1   : > { %731 = vrot.lane.b32.xlu2 %v709_v22, %s1225_s17 }
 0x3a2   : > { %790 = vmatpush.bf16.msrb.mxu3 %v1037_v57 }
 0x3a6   : > { %791 = vmatpush.bf16.msrb.mxu3 %v1036_v59 }
 0x3a7   : > { %v800_v11 = vpop.permute.xlu1 %799 }
 0x3f4   : > { %v596_v33 = vpop.xlane.xlu0 %595 }
 0x3f5   : > { %1119 = vrcp.f32 %v596_v33 }
 0x3f6   : > { %1121 = vtanh.f32 %v700_v39 }
 0x3fb   : > { %v1120_v41 = vpop.eup %1119 }
 0x3fc   : > { %v599_v40 = vpop.xlane.xlu2 %598  ;;  %v1122_v43 = vpop.eup %1121 }
 0x3fd   : > { %1123 = vrcp.f32 %v599_v40  ;;  %v704_v47 = vadd.f32 1.0, %v1122_v43 }
 0x3ff   : > { %v706_v49 = vmul.f32 %v704_v47, %v690_v48 }
 0x401   : > { %v708_v50 = vpack.c.bf16 %v706_v49, %v706_v49 }
 0x403   : > { %v1124_v45 = vpop.eup %1123 }
 0x404   : > { %v732_v63 = vpop.permute.xlu2 %731 }
 0x407   : > { %v618_v38 = vpop.f32.mrf.mxu1 }
 0x408   : > { %v625_v42 = vmul.f32 %v1120_v41, %v618_v38 }
 0x40c   : > { %v539_v28 = vpop.f32.mrf.mxu3 }
 0x40d   : > { %v546_v30 = vmul.f32 %v1116_v27, %v539_v28 }
 0x40f   : > { %548 = vst.msk [vmem:[#allocation2] sm:$0xff] %vm476_vm6, %v546_v30  ;;  %v620_v44 = vpop.f32.mrf.mxu1 }
 0x410   : > { %v626_v46 = vmul.f32 %v1124_v45, %v620_v44 }
 0x414   : > { %v541_v35 = vpop.f32.mrf.mxu3 }
 0x415   : > { %v547_v37 = vmul.f32 %v1118_v34, %v541_v35 }
 0x417   : > { %550 = vrot.lane.b32.xlu0 %v547_v37, %s1230_s28 }
 0x41f   : > { %628 = vrot.lane.b32.xlu0 %v625_v42, %s1225_s17 }
 0x427   : > { %634 = vrot.lane.b32.xlu0 %v626_v46, %s1227_s19  ;;  %s909_s19 = sshll.u32 %s268_s18, 3 }
 0x428   : > { %s270_s12 = scalar_lea.vmem [#allocation6], %s909_s19 }
 0x429   : > { %s817_s13 = sshll.u32 %s270_s12, 4  ;;  %s818_s13 = int_to_ptr.vmem [resolvable:$true] %s817_s13 }
 0x42f   : > { %729 = vrot.lane.b32.xlu0 %v708_v50, %s1225_s17  ;;  %s1175_s17 = scalar_lea.hbm %s1554_s6, 16 }
 0x430   : > { %p1177_p4 = scmp.lt.s32.totalorder %s1175_s17, %s1171_s16 }
 0x432   : > { %p1178_p7 = por %p1177_p4, %p1176_p3 }
 0x434   : > { %p1179_p8 = pnand %p1178_p7, %p1174_p2 }
 0x489   : > { %v551_v60 = vpop.permute.xlu0 %550 }
 0x48a   : > { %554 = vst.msk [vmem:[#allocation2] sm:$0xff] %vm553_vm10, %v551_v60 }
 0x491   : > { %v629_v61 = vpop.permute.xlu0 %628 }
 0x492   : > { %632 = vst.msk [vmem:[#allocation2] sm:$0xff] %vm631_vm11, %v629_v61 }
 0x499   : > { %v635_v62 = vpop.permute.xlu0 %634 }
 0x49a   : > { %638 = vst.msk [vmem:[#allocation2] sm:$0xff] %vm637_vm12, %v635_v62 }
 0x4a1   : > { %v730_v0 = vpop.permute.xlu0 %729  ;;  %v639_v1 = vld [vmem:[#allocation2] sm:$0xff] }
 0x4a2   : > { %v734_v3 = vsel %vm457_vm5, %v730_v0, %v732_v63  ;;  %v640_v4 = vpack.c.bf16 %v639_v1, %v639_v1 }
 0x4a3   : > { %792 = vmatmul.bf16.vlgmr.msrb.gmra.mxu3 %v734_v3 }
 0x4a4   : > { %983 = vmatmul.msk.bf16.vlgmr.msrb.gmra.mxu2 %vm285_vm0, %v640_v4 }
 0x526   : > { %v793_v7 = vpop.f32.mrf.mxu3 }
 0x527   : > { %v794_v8 = vadd.f32 %v793_v7, %v726_v5  ;;  %v686_v9 = vpop.f32.mrf.mxu2 }
 0x528   : > { %v687_v10 = vadd.f32 %v686_v9, %v649_v6 }
 0x52a   : > { %v797_v2 = vadd.f32 %v794_v8, %v687_v10 }
 0x52c   : > { %v802_v12 = vsel %vm285_vm0, %v797_v2, %v800_v11 }
 0x52d   : > { %803 = vst [vmem:[%s270_s12] sm:$0xff] %v802_v12 }
 0x52e   : > { %v795_v13 = vpop.f32.mrf.mxu3 }
 0x52f   : > { %1182 = shalt.err (!%p1179_p8)
}
 0x530   : > { %1048 = dma.vmem_to_hbm [thread:$0]  (%p1304_p5), %s818_s13, 128, %s820_s25, %s805_s14   ;;  %v688_v14 = vpop.f32.mrf.mxu2 }
 0x531 PF: > { %p1060_p9 = scmp.ge.s32.totalorder %s1221_s24, 2  ;;  %s831_s18 = sand.u32 1, %s1209_s21  }
 0x532   : > { %s832_s29 = scalar_lea.sflag [#allocation5], %s831_s18 }
 0x533   : > { %p1055_p10 = pnand %p1060_p9, %p1308_p6 }
 0x535   : > { %p1056_p11 = pneg %p1055_p10 }
 0x537   : > { %1204 = dma.done.wait (%p1056_p11), %s832_s29, 128  }
 0x538   : > { %1206 = vsyncadd (%p1056_p11), %s832_s29, 4294967168  ;;  %p17_p12 = scmp.ge.s32.totalorder %s1291_s27, 4   ;;  %s1557_s21 = smov %s1213_s22 }
 0x539   : > { %s1558_s22 = smov %s1217_s23  ;;  %s1559_s23 = smov %s1302_s30 }
 0x53a   : > { %s1560_s24 = smov %s1291_s27  ;;  %19 = sbr.rel (!%p17_p12) target bundleno = 4 (0x4), region = 87 }
 0x53f   :  { %838 = vsyncpa [#allocation4], 1 }
 0x540   :  { %840 = vsyncpa [#allocation4 + $0x1], 1 }
 0x541   :  { %841 = vsyncpa [#allocation5], 1 }
 0x542   :  { %843 = vsyncpa [#allocation5 + $0x1], 1 }

</bundles_post_ra>
